<compile_context>
chip_gen: v7x
topology: tpu7x:2x2x1
jax: 0.10.0
libtpu: 0.0.40
codegen_flags: <defaults>
</compile_context>

<pallas_src>
import functools
import math

import jax
import jax.numpy as jnp
from jax import lax
from jax.experimental import pallas as pl
from jax.experimental.pallas import tpu as pltpu  # noqa: F401  (TPU backend; params if needed)

# ---- model hyper-parameters (small, consistent with the module) ----
B = 2          # batch
S = 8          # seq_len
D = 32         # dim (embed_dim)
H = 4          # heads
HD = D // H    # head_dim
LN_EPS = 1e-5


def _self_attention_kernel(x_ref, wqkv_ref, wo_ref, bias_ref, o_ref, *,
                           batch, seq, dim, heads, head_dim):
    bs = batch * seq
    x = x_ref[...]                                            # (B*S, D), f32

    # --- LayerNorm (affine gamma/beta folded into wqkv/bias in the wrapper) ---
    mean = jnp.mean(x, axis=-1, keepdims=True)
    centered = x - mean
    var = jnp.mean(centered * centered, axis=-1, keepdims=True)
    xn = centered * lax.rsqrt(var + LN_EPS)                   # (B*S, D)

    bias = bias_ref[...]                                      # (1, 4D) packed
    b_qkv = bias[:, :3 * dim]
    b_out = bias[:, 3 * dim:]

    # --- fused QKV projection (gamma/beta + 1/sqrt(hd) scale pre-folded) ---
    qkv = jnp.dot(xn, wqkv_ref[...],
                  preferred_element_type=jnp.float32) + b_qkv  # (B*S, 3D)

    # --- single relayout to head-batched layout (replaces 3 per-tensor transposes) ---
    qkv = qkv.reshape(batch, seq, 3 * heads, head_dim).transpose(0, 2, 1, 3)
    # (B, 3H, S, HD); leading-dim slices / merges below are cheap (no lane/sublane moves).
    qh = qkv[:, 0 * heads:1 * heads].reshape(batch * heads, seq, head_dim)
    kh = qkv[:, 1 * heads:2 * heads].reshape(batch * heads, seq, head_dim)
    vh = qkv[:, 2 * heads:3 * heads].reshape(batch * heads, seq, head_dim)

    # --- all (batch, head) attention problems as leading-batch dot_generals ---
    s = jnp.einsum('bqd,bkd->bqk', qh, kh,
                   preferred_element_type=jnp.float32)         # (B*H, S, S)
    s = s - jnp.max(s, axis=-1, keepdims=True)
    p = jnp.exp(s)
    p = p / jnp.sum(p, axis=-1, keepdims=True)                 # exact softmax
    ctx = jnp.einsum('bqk,bkd->bqd', p, vh,
                     preferred_element_type=jnp.float32)       # (B*H, S, HD)

    # --- output projection with the head-merge folded in:
    #     heads stay a leading batch dim, partial projections summed afterwards ---
    ctx = (ctx.reshape(batch, heads, seq, head_dim)
              .transpose(1, 0, 2, 3)                           # leading dims only
              .reshape(heads, bs, head_dim))                   # (H, B*S, HD)
    partial = jnp.einsum('hqd,hdo->hqo', ctx, wo_ref[...],
                         preferred_element_type=jnp.float32)   # (H, B*S, D)
    out = jnp.sum(partial, axis=0) + b_out                     # (B*S, D)
    o_ref[...] = out.astype(o_ref.dtype)


def self_attention_pallas(x, gamma, beta, w_qkv_t, b_qkv, w_out_t, b_out, *, heads=H):
    """x: (B, S, D).  w_qkv_t: (D, 3D) = in_proj_weight^T.  w_out_t: (D, D) = out_proj.weight^T."""
    b, s, d = x.shape
    hd = d // heads
    bs = b * s
    f32 = jnp.float32

    # ---- parameter-prep-time folding (done once; zero in-kernel cost) ----
    w_qkv_f = (gamma.reshape(d, 1).astype(f32) * w_qkv_t.astype(f32))          # (D, 3D)
    b_qkv_f = (b_qkv.reshape(1, 3 * d).astype(f32)
               + beta.reshape(1, d).astype(f32) @ w_qkv_t.astype(f32))          # (1, 3D)
    scale = 1.0 / math.sqrt(hd)
    w_qkv_f = w_qkv_f.at[:, :d].multiply(scale)      # fold attention scale into the Q columns
    b_qkv_f = b_qkv_f.at[:, :d].multiply(scale)
    bias_packed = jnp.concatenate([b_qkv_f, b_out.reshape(1, d).astype(f32)],
                                  axis=-1)                                      # (1, 4D)
    wo3 = w_out_t.astype(f32).reshape(heads, hd, d)                             # (H, HD, D)

    x2 = x.reshape(bs, d)                            # fold batch into one dense block
    kernel = functools.partial(_self_attention_kernel, batch=b, seq=s, dim=d,
                               heads=heads, head_dim=hd)
    out2 = pl.pallas_call(
        kernel,
        out_shape=jax.ShapeDtypeStruct((bs, d), x.dtype),
        # No grid: a single invocation; every operand is one full-array VMEM block (~25 KiB).
        in_specs=[
            pl.BlockSpec((bs, d), lambda: (0, 0)),           # x (batch folded)
            pl.BlockSpec((d, 3 * d), lambda: (0, 0)),        # W_qkv^T with LN affine + scale folded
            pl.BlockSpec((heads, hd, d), lambda: (0, 0, 0)), # W_out^T reshaped per head
            pl.BlockSpec((1, 4 * d), lambda: (0, 0)),        # packed biases [b_qkv' | b_out]
        ],
        out_specs=pl.BlockSpec((bs, d), lambda: (0, 0)),
    )(x2, w_qkv_f, wo3, bias_packed)
    return out2.reshape(b, s, d)


def self_attention_ref(x, gamma, beta, w_qkv_t, b_qkv, w_out_t, b_out):
    """Pure-JAX reference matching nn.LayerNorm + nn.MultiheadAttention semantics."""
    x = x.astype(jnp.float32)
    mean = jnp.mean(x, axis=-1, keepdims=True)
    var = jnp.mean((x - mean) ** 2, axis=-1, keepdims=True)
    xn = (x - mean) / jnp.sqrt(var + LN_EPS) * gamma + beta
    qkv = xn @ w_qkv_t + b_qkv                               # (B, S, 3D)
    q, k, v = jnp.split(qkv, 3, axis=-1)

    def split_heads(t):  # (B, S, D) -> (B, H, S, hd)
        return t.reshape(B, S, H, HD).transpose(0, 2, 1, 3)

    qh, kh, vh = split_heads(q), split_heads(k), split_heads(v)
    scores = jnp.einsum("bhqd,bhkd->bhqk", qh, kh) / math.sqrt(HD)
    p = jax.nn.softmax(scores, axis=-1)
    ctx = jnp.einsum("bhqk,bhkd->bhqd", p, vh)               # (B, H, S, hd)
    ctx = ctx.transpose(0, 2, 1, 3).reshape(B, S, D)
    return ctx @ w_out_t + b_out


if __name__ == "__main__":
    key = jax.random.PRNGKey(0)
    k_x, k_qkv, k_bq, k_out, k_bo, k_g, k_b = jax.random.split(key, 7)

    # Deterministic parameter init (shapes mirror nn.LayerNorm / nn.MultiheadAttention).
    x = jax.random.normal(k_x, (B, S, D), dtype=jnp.float32)
    gamma = 1.0 + 0.1 * jax.random.normal(k_g, (D,), dtype=jnp.float32)   # LayerNorm weight
    beta = 0.1 * jax.random.normal(k_b, (D,), dtype=jnp.float32)          # LayerNorm bias
    # in_proj_weight is (3D, D) in PyTorch; store its transpose (D, 3D) for x @ W.
    w_qkv_t = jax.random.normal(k_qkv, (D, 3 * D), dtype=jnp.float32) * 0.05
    b_qkv = 0.05 * jax.random.normal(k_bq, (3 * D,), dtype=jnp.float32)
    # out_proj.weight is (D, D); store its transpose.
    w_out_t = jax.random.normal(k_out, (D, D), dtype=jnp.float32) * 0.05
    b_out = 0.05 * jax.random.normal(k_bo, (D,), dtype=jnp.float32)

    out = self_attention_pallas(x, gamma, beta, w_qkv_t, b_qkv, w_out_t, b_out)
    out = jax.block_until_ready(out)

    ref = self_attention_ref(x, gamma, beta, w_qkv_t, b_qkv, w_out_t, b_out)
    assert out.shape == (B, S, D)
    # Exact softmax + f32 end-to-end; only reassociation from the weight folding differs.
    assert jnp.allclose(out, ref, atol=5e-4, rtol=5e-4), "mismatch vs reference"

    print("KERNEL_OK")
</pallas_src>

<mosaic_0001>
module attributes {stable_mosaic.version = 11 : i64} {
  func.func @_self_attention_kernel(%arg0: memref<16x32xf32, #tpu.memory_space<vmem>>, %arg1: memref<32x96xf32, #tpu.memory_space<vmem>>, %arg2: memref<4x8x32xf32, #tpu.memory_space<vmem>>, %arg3: memref<1x128xf32, #tpu.memory_space<vmem>>, %arg4: memref<16x32xf32, #tpu.memory_space<vmem>>) attributes {dimension_semantics = [], scalar_prefetch = 0 : i64, scratch_operands = 0 : i64, tpu.core_type = #tpu.core_type<tc>} {
    %c0 = arith.constant 0 : index
    %c0_0 = arith.constant 0 : index
    %0 = vector.load %arg0[%c0, %c0_0] : memref<16x32xf32, #tpu.memory_space<vmem>>, vector<16x32xf32>
    %cst = arith.constant dense<0.000000e+00> : vector<16xf32>
    %1 = vector.multi_reduction <add>, %0, %cst [1] : vector<16x32xf32> to vector<16xf32>
    %2 = vector.shape_cast %1 : vector<16xf32> to vector<16x1xf32>
    %cst_1 = arith.constant 3.200000e+01 : f32
    %3 = vector.broadcast %cst_1 : f32 to vector<16x1xf32>
    %4 = arith.divf %2, %3 : vector<16x1xf32>
    %5 = vector.broadcast %4 : vector<16x1xf32> to vector<16x32xf32>
    %6 = arith.subf %0, %5 : vector<16x32xf32>
    %7 = arith.mulf %6, %6 : vector<16x32xf32>
    %cst_2 = arith.constant dense<0.000000e+00> : vector<16xf32>
    %8 = vector.multi_reduction <add>, %7, %cst_2 [1] : vector<16x32xf32> to vector<16xf32>
    %9 = vector.shape_cast %8 : vector<16xf32> to vector<16x1xf32>
    %cst_3 = arith.constant 3.200000e+01 : f32
    %10 = vector.broadcast %cst_3 : f32 to vector<16x1xf32>
    %11 = arith.divf %9, %10 : vector<16x1xf32>
    %cst_4 = arith.constant 9.99999974E-6 : f32
    %12 = vector.broadcast %cst_4 : f32 to vector<16x1xf32>
    %13 = arith.addf %11, %12 : vector<16x1xf32>
    %14 = math.rsqrt %13 : vector<16x1xf32>
    %15 = vector.broadcast %14 : vector<16x1xf32> to vector<16x32xf32>
    %16 = arith.mulf %6, %15 : vector<16x32xf32>
    %c0_5 = arith.constant 0 : index
    %c0_6 = arith.constant 0 : index
    %17 = vector.load %arg3[%c0_5, %c0_6] : memref<1x128xf32, #tpu.memory_space<vmem>>, vector<1x128xf32>
    %18 = vector.extract_strided_slice %17 {offsets = [0, 0], sizes = [1, 96], strides = [1, 1]} : vector<1x128xf32> to vector<1x96xf32>
    %19 = vector.extract_strided_slice %17 {offsets = [0, 96], sizes = [1, 32], strides = [1, 1]} : vector<1x128xf32> to vector<1x32xf32>
    %c0_7 = arith.constant 0 : index
    %c0_8 = arith.constant 0 : index
    %20 = vector.load %arg1[%c0_7, %c0_8] : memref<32x96xf32, #tpu.memory_space<vmem>>, vector<32x96xf32>
    %cst_9 = arith.constant dense<0.000000e+00> : vector<16x96xf32>
    %21 = tpu.matmul %16, %20, %cst_9 {dimension_numbers = #tpu.dot_dimension_numbers<[1], [0], [0], [1], [0, 0, 1, 1], [], []>} : vector<16x32xf32>, vector<32x96xf32>, vector<16x96xf32> -> vector<16x96xf32>
    %22 = vector.broadcast %18 : vector<1x96xf32> to vector<16x96xf32>
    %23 = arith.addf %21, %22 : vector<16x96xf32>
    %24 = vector.shape_cast %23 : vector<16x96xf32> to vector<2x8x12x8xf32>
    %25 = tpu.transpose %24, [0, 2, 1, 3] : vector<2x8x12x8xf32> -> vector<2x12x8x8xf32>
    %26 = vector.extract_strided_slice %25 {offsets = [0, 0, 0, 0], sizes = [2, 4, 8, 8], strides = [1, 1, 1, 1]} : vector<2x12x8x8xf32> to vector<2x4x8x8xf32>
    %27 = vector.shape_cast %26 : vector<2x4x8x8xf32> to vector<8x8x8xf32>
    %28 = vector.extract_strided_slice %25 {offsets = [0, 4, 0, 0], sizes = [2, 4, 8, 8], strides = [1, 1, 1, 1]} : vector<2x12x8x8xf32> to vector<2x4x8x8xf32>
    %29 = vector.shape_cast %28 : vector<2x4x8x8xf32> to vector<8x8x8xf32>
    %30 = vector.extract_strided_slice %25 {offsets = [0, 8, 0, 0], sizes = [2, 4, 8, 8], strides = [1, 1, 1, 1]} : vector<2x12x8x8xf32> to vector<2x4x8x8xf32>
    %31 = vector.shape_cast %30 : vector<2x4x8x8xf32> to vector<8x8x8xf32>
    "tpu.trace_start"() <{level = 10 : i32, message = "bqd,bkd->bqk"}> : () -> ()
    %cst_10 = arith.constant dense<0.000000e+00> : vector<8x8x8xf32>
    %32 = tpu.matmul %27, %29, %cst_10 {dimension_numbers = #tpu.dot_dimension_numbers<[2], [2], [1], [1], [0, 0, 0, 1, 1, 1], [0], [0]>} : vector<8x8x8xf32>, vector<8x8x8xf32>, vector<8x8x8xf32> -> vector<8x8x8xf32>
    "tpu.trace_stop"() : () -> ()
    %cst_11 = arith.constant dense<0xFF800000> : vector<8x8xf32>
    %33 = vector.multi_reduction <maximumf>, %32, %cst_11 [2] : vector<8x8x8xf32> to vector<8x8xf32>
    %34 = vector.shape_cast %33 : vector<8x8xf32> to vector<8x8x1xf32>
    %35 = vector.broadcast %34 : vector<8x8x1xf32> to vector<8x8x8xf32>
    %36 = arith.subf %32, %35 : vector<8x8x8xf32>
    %37 = math.exp %36 : vector<8x8x8xf32>
    %cst_12 = arith.constant dense<0.000000e+00> : vector<8x8xf32>
    %38 = vector.multi_reduction <add>, %37, %cst_12 [2] : vector<8x8x8xf32> to vector<8x8xf32>
    %39 = vector.shape_cast %38 : vector<8x8xf32> to vector<8x8x1xf32>
    %40 = vector.broadcast %39 : vector<8x8x1xf32> to vector<8x8x8xf32>
    %41 = arith.divf %37, %40 : vector<8x8x8xf32>
    "tpu.trace_start"() <{level = 10 : i32, message = "bqk,bkd->bqd"}> : () -> ()
    %cst_13 = arith.constant dense<0.000000e+00> : vector<8x8x8xf32>
    %42 = tpu.matmul %41, %31, %cst_13 {dimension_numbers = #tpu.dot_dimension_numbers<[2], [1], [1], [2], [0, 0, 0, 1, 1, 2], [0], [0]>} : vector<8x8x8xf32>, vector<8x8x8xf32>, vector<8x8x8xf32> -> vector<8x8x8xf32>
    "tpu.trace_stop"() : () -> ()
    %43 = vector.shape_cast %42 : vector<8x8x8xf32> to vector<2x4x8x8xf32>
    %44 = tpu.transpose %43, [1, 0, 2, 3] : vector<2x4x8x8xf32> -> vector<4x2x8x8xf32>
    %45 = vector.shape_cast %44 : vector<4x2x8x8xf32> to vector<4x16x8xf32>
    %c0_14 = arith.constant 0 : index
    %c0_15 = arith.constant 0 : index
    %c0_16 = arith.constant 0 : index
    %46 = vector.load %arg2[%c0_14, %c0_15, %c0_16] : memref<4x8x32xf32, #tpu.memory_space<vmem>>, vector<4x8x32xf32>
    "tpu.trace_start"() <{level = 10 : i32, message = "hqd,hdo->hqo"}> : () -> ()
    %cst_17 = arith.constant dense<0.000000e+00> : vector<4x16x32xf32>
    %47 = tpu.matmul %45, %46, %cst_17 {dimension_numbers = #tpu.dot_dimension_numbers<[2], [1], [1], [2], [0, 0, 0, 1, 1, 2], [0], [0]>} : vector<4x16x8xf32>, vector<4x8x32xf32>, vector<4x16x32xf32> -> vector<4x16x32xf32>
    "tpu.trace_stop"() : () -> ()
    %cst_18 = arith.constant dense<0.000000e+00> : vector<16x32xf32>
    %48 = vector.multi_reduction <add>, %47, %cst_18 [0] : vector<4x16x32xf32> to vector<16x32xf32>
    %49 = vector.broadcast %19 : vector<1x32xf32> to vector<16x32xf32>
    %50 = arith.addf %48, %49 : vector<16x32xf32>
    %c0_19 = arith.constant 0 : index
    %c0_20 = arith.constant 0 : index
    %51 = vector.load %arg4[%c0_19, %c0_20] : memref<16x32xf32, #tpu.memory_space<vmem>>, vector<16x32xf32>
    tpu.vector_store %arg4[%c0_19, %c0_20], %50 {strides = array<i32>} : memref<16x32xf32, #tpu.memory_space<vmem>>, vector<16x32xf32>,
    return
  }
}

</mosaic_0001>

<bundles_post_ra>
// kernel: tpu_custom_call.1
= control target key start
LH: loop header
LB: loop body
LE: loop exit
PB: predicated region body
PF: predicated region fallthrough
CT: control target
= control target key end

     0   :  { %9 = vsyncpa [#allocation3], 0  ;;  %s3537_s0 = inlined_call_operand.hbm [shape: f32[16,32], index: 0, kind: input, shape index: {}]   ;;  %s3538_s1 = inlined_call_operand.hbm [shape: f32[32,96], index: 1, kind: input, shape index: {}]   ;;  %s3539_s2 = inlined_call_operand.hbm [shape: f32[4,8,32], index: 2, kind: input, shape index: {}]   ;;  %s3540_s3 = inlined_call_operand.vmem [shape: f32[1,128], index: 3, kind: input, shape index: {}]   ;;  %s3541_s4 = inlined_call_operand.hbm [shape: f32[16,32], index: 4, kind: output, shape index: {}]  }
   0x1   :  { %10 = vsyncpa [#allocation6], 0 }
   0x2   :  { %11 = vsyncpa [#allocation4], 0  ;;  %s3089_s15 = smov [#allocation5]   ;;  %s3090_s17 = smov [#allocation2]  }
   0x3   :  { %s29_s16 = sshll.u32 %s3089_s15, 4  ;;  %s17_s18 = sshll.u32 %s3090_s17, 4  ;;  %s30_s16 = int_to_ptr.vmem [resolvable:$true] %s29_s16  ;;  %s3136_s18 = int_to_ptr.vmem [resolvable:$true] %s17_s18 }
   0x4   :  { %s2995_s21 = scalar_lea.hbm %s3538_s1, 512 }
   0x5   :  { %p2996_p0 = scmp.ne.s32.totalorder %s3538_s1, %s2995_s21  ;;  %p2999_p1 = scmp.lt.u32.totalorder %s2995_s21, %s3538_s1 }
   0x7   :  { %p3001_p2 = pnand %p2999_p1, %p2996_p0 }
   0x9   :  { %3004 = shalt.err (!%p3001_p2)
}
   0xa   :  { %s3005_s26 = scalar_lea.vmem %s30_s16, 512  ;;  %p3010_p4 = scmp.lt.s32.totalorder %s30_s16, %s30_s16 }
   0xb   :  { %p3006_p3 = scmp.ne.s32.totalorder %s30_s16, %s3005_s26  ;;  %p3011_p5 = scmp.lt.s32.totalorder %s3005_s26, %s3005_s26 }
   0xd   :  { %p3012_p6 = por %p3011_p5, %p3010_p4 }
   0xf   :  { %p3013_p7 = pnand %p3012_p6, %p3006_p3 }
  0x11   :  { %3016 = shalt.err (!%p3013_p7)
}
  0x12   :  { %s3091_s27 = smov 128   ;;  %s3092_s28 = smov 8  }
  0x13   :  { %35 = dma.hbm_to_vmem [thread:$0]  %s3538_s1, 512, %s30_s16, [#allocation6], %s3091_s27, %s3091_s27, %s3092_s28  }
  0x14   :  { %s3017_s7 = scalar_lea.hbm %s3537_s0, 256 }
  0x15   :  { %p3018_p8 = scmp.ne.s32.totalorder %s3537_s0, %s3017_s7  ;;  %p3021_p9 = scmp.lt.u32.totalorder %s3017_s7, %s3537_s0 }
  0x17   :  { %p3023_p10 = pnand %p3021_p9, %p3018_p8 }
  0x19   :  { %3026 = shalt.err (!%p3023_p10)
}
  0x1a   :  { %s3027_s12 = scalar_lea.vmem %s3136_s18, 256  ;;  %p3032_p12 = scmp.lt.s32.totalorder %s3136_s18, %s3136_s18 }
  0x1b   :  { %p3028_p11 = scmp.ne.s32.totalorder %s3136_s18, %s3027_s12  ;;  %p3033_p13 = scmp.lt.s32.totalorder %s3027_s12, %s3027_s12 }
  0x1d   :  { %p3034_p0 = por %p3033_p13, %p3032_p12 }
  0x1f   :  { %p3035_p1 = pnand %p3034_p0, %p3028_p11 }
  0x21   :  { %3038 = shalt.err (!%p3035_p1)
}
  0x22   :  { %23 = dma.hbm_to_vmem [thread:$0]  %s3537_s0, 256, %s3136_s18, [#allocation3], %s3091_s27, %s3091_s27, %s3092_s28  }
  0x23   :  { %s3093_s14 = smov [#allocation7]   ;;  %s3039_s19 = scalar_lea.hbm %s3539_s2, 512 }
  0x24   :  { %s41_s15 = sshll.u32 %s3093_s14, 4  ;;  %p3040_p2 = scmp.ne.s32.totalorder %s3539_s2, %s3039_s19  ;;  %s42_s15 = int_to_ptr.vmem [resolvable:$true] %s41_s15 }
  0x25   :  { %p3043_p3 = scmp.lt.u32.totalorder %s3039_s19, %s3539_s2 }
  0x27   :  { %p3045_p4 = pnand %p3043_p3, %p3040_p2 }
  0x29   :  { %3048 = shalt.err (!%p3045_p4)
}
  0x2a   :  { %s3049_s24 = scalar_lea.vmem %s42_s15, 512  ;;  %p3054_p6 = scmp.lt.s32.totalorder %s42_s15, %s42_s15 }
  0x2b   :  { %p3050_p5 = scmp.ne.s32.totalorder %s42_s15, %s3049_s24  ;;  %p3055_p7 = scmp.lt.s32.totalorder %s3049_s24, %s3049_s24 }
  0x2d   :  { %p3056_p8 = por %p3055_p7, %p3054_p6 }
  0x2f   :  { %p3057_p9 = pnand %p3056_p8, %p3050_p5 }
  0x31   :  { %3060 = shalt.err (!%p3057_p9)
}
  0x32   :  { %47 = dma.hbm_to_vmem [thread:$0]  %s3539_s2, 512, %s42_s15, [#allocation6], %s3091_s27, %s3091_s27, %s3092_s28  }
  0x33   :  { %3083 = dma.done.wait [#allocation3], 256  }
  0x34   :  { %3084 = vsyncadd [#allocation3], 4294967040 }
  0x35   :  { %3085 = dma.done.wait [#allocation6], 1024  }
  0x36   :  { %3086 = vsyncadd [#allocation6], 4294966272  ;;  %vm61_vm0 = vcmask 261120   ;;  %v59_v0 = vld [vmem:[#allocation2] sm:$0xff]  ;;  %v60_v1 = vld [vmem:[#allocation2 + $0x8] sm:$0xff]  ;;  %s3094_s26 = smov 96   ;;  %v254_v40 = vlaneseq }
  0x37   :  { %v62_v2 = vsel %vm61_vm0, %v59_v0, 0.0  ;;  %v65_v3 = vsel %vm61_vm0, %v60_v1, 0.0  ;;  %v90_v14 = vld [vmem:[#allocation5] sm:$0xff]  ;;  %v91_v15 = vld [vmem:[#allocation5 + $0x8] sm:$0xff]  ;;  %v92_v16 = vld [vmem:[#allocation5 + $0x10] sm:$0xff]  ;;  %s3095_s29 = smov 88  }
  0x38   :  { %63 = vadd.xlane.f32.xlu0 %v62_v2  ;;  %v2929_v17 = vpack.c.bf16 %v91_v15, %v90_v14  ;;  %v93_v18 = vld [vmem:[#allocation5 + $0x18] sm:$0xff]  ;;  %v3197_v30 = vld [vmem:[%s3540_s3] ss:$0 sm:$0xff]  ;;  %s3096_s30 = smov 120   ;;  %s3097_s3 = smov 80   ;;  %v3101_v35 = vmov 0.0  }
  0x39   :  { %v2933_v19 = vpack.c.bf16 %v93_v18, %v92_v16  ;;  %s3098_s5 = smov 104   ;;  %s3099_s6 = smov 72   ;;  %2829 = vmatprep.subr.mxu1 %v3101_v35  ;;  %vm3102_vm1 = vmmov 0   ;;  %v3103_v38 = vmov 1983009808   ;;  %v255_v46 = vshrl.u32 %v254_v40, 7 }
  0x3a   :  { %2930 = vmatprep.subr.bf16.mxu0 %v2929_v17  ;;  %s3100_s7 = smov 112   ;;  %2831 = vmatprep.mubr.msk.f32.mxu1 %vm3102_vm1, %v3101_v35  ;;  %v252_v39 = vunpack.c.l.s4 %v3103_v38  ;;  %v3104_v43 = vmov 1934713408   ;;  %vm1065_vm2 = vcmask 64512   ;;  %s3105_s8 = smov 56  }
  0x3b   :  { %2932 = vmatpush3.bf16.msra.mxu0 %v2929_v17  ;;  %v316_v44 = vunpack.c.l.s4 %v3104_v43  ;;  %s3106_s9 = smov 48   ;;  %s3107_s10 = smov 64  }
  0x3c   :  { %66 = vadd.xlane.f32.xlu0 %v65_v3  ;;  %2934 = vmatprep.subr.bf16.mxu0 %v2933_v19  ;;  %v253_v45 = vunpack.c.0.s8 %v252_v39  ;;  %s3108_s11 = smov 40   ;;  %s3109_s12 = smov 32  }
  0x3d   :  { %v317_v49 = vunpack.c.0.s8 %v316_v44  ;;  %s3110_s1 = smov [#allocation8]  }
  0x3e   :  { %v3227_v50 = vsub.s32 %v253_v45, %v255_v46  ;;  %s2700_s13 = sshll.u32 %s3110_s1, 4  ;;  %s2701_s13 = int_to_ptr.vmem [resolvable:$true] %s2700_s13 }
  0x3f   :  { %2936 = vmatpush3.bf16.msra.mxu0 %v2933_v19  ;;  %v3229_v59 = vsub.s32 %v317_v49, %v255_v46  ;;  %s3061_s14 = scalar_lea.vmem %s2701_s13, 256  ;;  %p3066_p11 = scmp.lt.s32.totalorder %s2701_s13, %s2701_s13 }
  0x40   :  { %2839 = vmatprep.subr.mxu0 %v3101_v35  ;;  %p3062_p10 = scmp.ne.s32.totalorder %s2701_s13, %s3061_s14  ;;  %p3067_p12 = scmp.lt.s32.totalorder %s3061_s14, %s3061_s14 }
  0x42   :  { %p3068_p13 = por %p3067_p12, %p3066_p11 }
  0x44   :  { %p3069_p0 = pnand %p3068_p13, %p3062_p10 }
  0xc5   :  { %v64_v4 = vpop.xlane.xlu0 %63 }
  0xc6   :  { %v69_v5 = vmul.f32 0.03125, %v64_v4 }
  0xc8   :  { %v71_v6 = vsub.f32 %v59_v0, %v69_v5 }
  0xc9   :  { %v67_v7 = vpop.xlane.xlu0 %66 }
  0xca   :  { %v70_v8 = vmul.f32 0.03125, %v67_v7  ;;  %v73_v9 = vmul.f32 %v71_v6, %v71_v6 }
  0xcc   :  { %v72_v10 = vsub.f32 %v60_v1, %v70_v8  ;;  %v75_v11 = vsel %vm61_vm0, %v73_v9, 0.0 }
  0xcd   :  { %76 = vadd.xlane.f32.xlu1 %v75_v11 }
  0xce   :  { %v74_v12 = vmul.f32 %v72_v10, %v72_v10 }
  0xd0   :  { %v78_v13 = vsel %vm61_vm0, %v74_v12, 0.0 }
  0xd1   :  { %79 = vadd.xlane.f32.xlu1 %v78_v13 }
 0x15a   :  { %v77_v20 = vpop.xlane.xlu1 %76 }
 0x15b   :  { %v81_v21 = vmul.f32 0.03125, %v77_v20 }
 0x15d   :  { %v83_v22 = vadd.f32 1e-05, %v81_v21 }
 0x15e   :  { %v80_v23 = vpop.xlane.xlu1 %79 }
 0x15f   :  { %2959 = vrsqrt.f32 %v83_v22  ;;  %v82_v24 = vmul.f32 0.03125, %v80_v23 }
 0x161   :  { %v84_v25 = vadd.f32 1e-05, %v82_v24 }
 0x163   :  { %2961 = vrsqrt.f32 %v84_v25 }
 0x169   :  { %v2960_v26 = vpop.eup %2959 }
 0x16a   :  { %v87_v27 = vmul.f32 %v2960_v26, %v71_v6 }
 0x16c   :  { %2826 = vmatprep.mubr.msk.f32.mxu0 %vm61_vm0, %v87_v27 }
 0x16d   :  { %v2962_v28 = vpop.eup %2961 }
 0x16e   :  { %v88_v29 = vmul.f32 %v2962_v28, %v72_v10 }
 0x170   :  { %2827 = vmatmul.mubr.msk.f32.vlgmr.msra.gmra.mrb[0].mxu0 %vm61_vm0, %v88_v29 }
 0x171   :  { %2841 = vmatprep.mubr.msk.f32.mxu0 %vm3102_vm1, %v3101_v35 }
 0x243   :  { %v2828_v31 = vpop.f32.mrb[0].mxu0 }
 0x244   :  { %v3200_v32 = vadd.f32 %v2828_v31, %v3197_v30  ;;  %v172_v33 = vpop.f32.mrb[1].mxu0 }
 0x245   :  { %v3203_v34 = vadd.f32 %v3197_v30, %v172_v33 }
 0x246   :  { %203 = vrot.lane.b32.xlu1 %v3200_v32, %s3094_s26 }
 0x247   :  { %201 = vrot.lane.b32.xlu0 %v3203_v34, %s3094_s26 }
 0x24a   :  { %207 = vrot.lane.b32.xlu1 %v3203_v34, %s3095_s29 }
 0x24b   :  { %183 = vrot.lane.b32.xlu0 %v3203_v34, %s3096_s30 }
 0x24e   :  { %213 = vrot.lane.b32.xlu1 %v3203_v34, %s3097_s3 }
 0x24f   :  { %195 = vrot.lane.b32.xlu0 %v3203_v34, %s3098_s5 }
 0x252   :  { %219 = vrot.lane.b32.xlu1 %v3203_v34, %s3099_s6 }
 0x253   :  { %209 = vrot.lane.b32.xlu0 %v3200_v32, %s3095_s29 }
 0x256   :  { %189 = vrot.lane.b32.xlu1 %v3203_v34, %s3100_s7 }
 0x257   :  { %221 = vrot.lane.b32.xlu0 %v3200_v32, %s3099_s6 }
 0x25a   :  { %215 = vrot.lane.b32.xlu1 %v3200_v32, %s3097_s3 }
 0x25b   :  { %191 = vrot.lane.b32.xlu0 %v3200_v32, %s3100_s7 }
 0x25e   :  { %185 = vrot.lane.b32.xlu1 %v3200_v32, %s3096_s30 }
 0x262   :  { %197 = vrot.lane.b32.xlu1 %v3200_v32, %s3098_s5 }
 0x2b8   :  { %v3225_v36 = vpop.permute.xlu1 %203 }
 0x2b9   :  { %v202_v37 = vpop.permute.xlu0 %201 }
 0x2bc   :  { %v208_v41 = vpop.permute.xlu1 %207 }
 0x2bd   :  { %v184_v42 = vpop.permute.xlu0 %183 }
 0x2c0   :  { %v214_v47 = vpop.permute.xlu1 %213 }
 0x2c1   :  { %v196_v48 = vpop.permute.xlu0 %195  ;;  %v281_v51 = vcombine.low %v202_v37, %v214_v47  ;;  %v282_v52 = vcombine.high %v202_v37, %v214_v47 }
 0x2c2   :  { %v265_v57 = vcombine.low %v184_v42, %v196_v48  ;;  %v266_v58 = vcombine.high %v184_v42, %v196_v48 }
 0x2c3   :  { %v289_v60 = vrot.slane %v281_v51, %v3227_v50  ;;  %v296_v61 = vrot.slane %v282_v52, %v3227_v50 }
 0x2c4   :  { %v220_v53 = vpop.permute.xlu1 %219  ;;  %v273_v10 = vrot.slane %v265_v57, %v3227_v50  ;;  %v280_v11 = vrot.slane %v266_v58, %v3227_v50 }
 0x2c5   :  { %v297_v54 = vcombine.low %v208_v41, %v220_v53  ;;  %v298_v55 = vcombine.high %v208_v41, %v220_v53  ;;  %v210_v56 = vpop.permute.xlu0 %209 }
 0x2c7   :  { %v305_v62 = vrot.slane %v297_v54, %v3227_v50  ;;  %v312_v63 = vrot.slane %v298_v55, %v3227_v50 }
 0x2c8   :  { %v190_v0 = vpop.permute.xlu1 %189 }
 0x2c9   :  { %v345_v1 = vcombine.low %v289_v60, %v305_v62  ;;  %v346_v2 = vcombine.high %v289_v60, %v305_v62  ;;  %v361_v3 = vcombine.low %v296_v61, %v312_v63  ;;  %v362_v4 = vcombine.high %v296_v61, %v312_v63  ;;  %v222_v5 = vpop.permute.xlu0 %221 }
 0x2ca   :  { %v249_v6 = vcombine.low %v3203_v34, %v190_v0  ;;  %v250_v7 = vcombine.high %v3203_v34, %v190_v0  ;;  %v501_v8 = vcombine.low %v210_v56, %v222_v5  ;;  %v502_v9 = vcombine.high %v210_v56, %v222_v5 }
 0x2cb   :  { %v353_v12 = vrot.slane %v345_v1, %v3229_v59  ;;  %v360_v13 = vrot.slane %v346_v2, %v3229_v59  ;;  %v3242_v14 = vrot.slane %v361_v3, %v3229_v59  ;;  %v3245_v15 = vrot.slane %v362_v4, %v3229_v59 }
 0x2cc   :  { %v257_v16 = vrot.slane %v249_v6, %v3227_v50  ;;  %v264_v17 = vrot.slane %v250_v7, %v3227_v50  ;;  %v216_v18 = vpop.permute.xlu1 %215  ;;  %v509_v21 = vrot.slane %v501_v8, %v3227_v50  ;;  %v516_v22 = vrot.slane %v502_v9, %v3227_v50 }
 0x2cd   :  { %v2717_v19 = vcombine.low %v353_v12, %v360_v13  ;;  %v2719_v20 = vcombine.high %v353_v12, %v360_v13  ;;  %v192_v23 = vpop.permute.xlu0 %191  ;;  %v485_v28 = vcombine.low %v3225_v36, %v216_v18  ;;  %v486_v29 = vcombine.high %v3225_v36, %v216_v18 }
 0x2ce   :  { %v313_v24 = vcombine.low %v257_v16, %v273_v10  ;;  %v314_v25 = vcombine.high %v257_v16, %v273_v10  ;;  %v329_v26 = vcombine.low %v264_v17, %v280_v11  ;;  %v330_v27 = vcombine.high %v264_v17, %v280_v11 }
 0x2cf   :  { %v453_v31 = vcombine.low %v3200_v32, %v192_v23  ;;  %v454_v33 = vcombine.high %v3200_v32, %v192_v23  ;;  %v2721_v42 = vcombine.low %v3242_v14, %v3245_v15  ;;  %v2723_v43 = vcombine.high %v3242_v14, %v3245_v15 }
 0x2d0   :  { %v321_v37 = vrot.slane %v313_v24, %v3229_v59  ;;  %v328_v38 = vrot.slane %v314_v25, %v3229_v59  ;;  %v337_v39 = vrot.slane %v329_v26, %v3229_v59  ;;  %v344_v40 = vrot.slane %v330_v27, %v3229_v59  ;;  %v186_v41 = vpop.permute.xlu1 %185 }
 0x2d1   :  { %v493_v36 = vrot.slane %v485_v28, %v3227_v50  ;;  %v500_v44 = vrot.slane %v486_v29, %v3227_v50  ;;  %v461_v56 = vrot.slane %v453_v31, %v3227_v50  ;;  %v468_v57 = vrot.slane %v454_v33, %v3227_v50 }
 0x2d2   :  { %v2716_v45 = vcombine.low %v321_v37, %v328_v38  ;;  %v2718_v46 = vcombine.high %v321_v37, %v328_v38  ;;  %v2720_v47 = vcombine.low %v337_v39, %v344_v40  ;;  %v2722_v48 = vcombine.high %v337_v39, %v344_v40 }
 0x2d3   :  { %v549_v49 = vcombine.low %v493_v36, %v509_v21  ;;  %v550_v51 = vcombine.high %v493_v36, %v509_v21  ;;  %v565_v52 = vcombine.low %v500_v44, %v516_v22  ;;  %v566_v53 = vcombine.high %v500_v44, %v516_v22 }
 0x2d4   :  { %v3266_v54 = vrot.slane %v2716_v45, %v3227_v50  ;;  %v3269_v55 = vrot.slane %v2718_v46, %v3227_v50  ;;  %v198_v58 = vpop.permute.xlu1 %197  ;;  %v697_v0 = vrot.slane %v2720_v47, %v3227_v50  ;;  %v713_v1 = vrot.slane %v2722_v48, %v3227_v50 }
 0x2d5   :  { %v557_v60 = vrot.slane %v549_v49, %v3229_v59  ;;  %v564_v61 = vrot.slane %v550_v51, %v3229_v59  ;;  %v573_v62 = vrot.slane %v565_v52, %v3229_v59  ;;  %v580_v63 = vrot.slane %v566_v53, %v3229_v59 }
 0x2d6   :  { %v469_v2 = vcombine.low %v186_v41, %v198_v58  ;;  %v470_v3 = vcombine.high %v186_v41, %v198_v58  ;;  %v672_v10 = vrot.slane %v2717_v19, %v3227_v50  ;;  %v688_v11 = vrot.slane %v2719_v20, %v3227_v50 }
 0x2d7   :  { %v2727_v4 = vcombine.low %v557_v60, %v564_v61  ;;  %v2729_v5 = vcombine.high %v557_v60, %v564_v61  ;;  %v2731_v6 = vcombine.low %v573_v62, %v580_v63  ;;  %v2733_v7 = vcombine.high %v573_v62, %v580_v63 }
 0x2d8   :  { %v477_v8 = vrot.slane %v469_v2, %v3227_v50  ;;  %v484_v9 = vrot.slane %v470_v3, %v3227_v50  ;;  %v722_v19 = vcombine.high %v3266_v54, %v3269_v55  ;;  %v754_v20 = vcombine.high %v697_v0, %v713_v1 }
 0x2d9   :  { %v3284_v12 = vrot.slane %v2727_v4, %v3227_v50  ;;  %v3287_v13 = vrot.slane %v2729_v5, %v3227_v50  ;;  %v3290_v14 = vrot.slane %v2731_v6, %v3227_v50  ;;  %v3293_v15 = vrot.slane %v2733_v7, %v3227_v50 }
 0x2da   :  { %v517_v16 = vcombine.low %v461_v56, %v477_v8  ;;  %v518_v17 = vcombine.high %v461_v56, %v477_v8  ;;  %v533_v18 = vcombine.low %v468_v57, %v484_v9  ;;  %v534_v21 = vcombine.high %v468_v57, %v484_v9 }
 0x2db   :  { %v941_v22 = vcombine.low %v3284_v12, %v3287_v13  ;;  %v973_v23 = vcombine.low %v3290_v14, %v3293_v15  ;;  %v704_v28 = vrot.slane %v2721_v42, %v3227_v50  ;;  %v720_v29 = vrot.slane %v2723_v43, %v3227_v50 }
 0x2dc   :  { %v525_v24 = vrot.slane %v517_v16, %v3229_v59  ;;  %v532_v25 = vrot.slane %v518_v17, %v3229_v59  ;;  %v541_v26 = vrot.slane %v533_v18, %v3229_v59  ;;  %v548_v27 = vrot.slane %v534_v21, %v3229_v59 }
 0x2dd   :  { %v737_v31 = vcombine.low %v672_v10, %v688_v11  ;;  %v738_v33 = vcombine.high %v672_v10, %v688_v11  ;;  %v769_v36 = vcombine.low %v704_v28, %v720_v29  ;;  %v770_v44 = vcombine.high %v704_v28, %v720_v29 }
 0x2de   :  { %v2726_v37 = vcombine.low %v525_v24, %v532_v25  ;;  %v2728_v38 = vcombine.high %v525_v24, %v532_v25  ;;  %v2730_v39 = vcombine.low %v541_v26, %v548_v27  ;;  %v2732_v40 = vcombine.high %v541_v26, %v548_v27 }
 0x2df   :  { %v745_v41 = vrot.slane %v737_v31, %v3229_v59  ;;  %v752_v45 = vrot.slane %v738_v33, %v3229_v59  ;;  %v777_v48 = vrot.slane %v769_v36, %v3229_v59  ;;  %v784_v49 = vrot.slane %v770_v44, %v3229_v59 }
 0x2e0   :  { %v869_v46 = vrot.slane %v2726_v37, %v3227_v50  ;;  %v885_v47 = vrot.slane %v2728_v38, %v3227_v50  ;;  %v901_v42 = vrot.slane %v2730_v39, %v3227_v50  ;;  %v917_v43 = vrot.slane %v2732_v40, %v3227_v50 }
 0x2e1   :  { %v721_v51 = vcombine.low %v3266_v54, %v3269_v55  ;;  %v753_v52 = vcombine.low %v697_v0, %v713_v1  ;;  %v789_v57 = vcombine.low %v745_v41, %v777_v48  ;;  %v791_v58 = vcombine.low %v752_v45, %v784_v49 }
 0x2e2   :  { %v925_v53 = vcombine.low %v869_v46, %v885_v47  ;;  %v957_v56 = vcombine.low %v901_v42, %v917_v43  ;;  %v942_v61 = vcombine.high %v3284_v12, %v3287_v13  ;;  %v736_v63 = vrot.slane %v722_v19, %v3229_v59 }
 0x2e3   :  { %v729_v60 = vrot.slane %v721_v51, %v3229_v59  ;;  %v761_v62 = vrot.slane %v753_v52, %v3229_v59  ;;  %v768_v2 = vrot.slane %v754_v20, %v3229_v59  ;;  %v974_v54 = vcombine.high %v3290_v14, %v3293_v15  ;;  %2830 = vmatpush3.xpose.msk.msra.mxu1 %vm1065_vm2, %v789_v57 }
 0x2e4   :  { %2840 = vmatpush3.xpose.msk.msra.mxu0 %vm1065_vm2, %v791_v58  ;;  %v949_v55 = vrot.slane %v941_v22, %v3229_v59  ;;  %v981_v0 = vrot.slane %v973_v23, %v3229_v59  ;;  %2834 = vmatprep.subr.mxu1 %v3101_v35  ;;  %v933_v4 = vrot.slane %v925_v53, %v3229_v59 }
 0x2e5   :  { %v785_v1 = vcombine.low %v729_v60, %v761_v62  ;;  %v787_v3 = vcombine.low %v736_v63, %v768_v2  ;;  %2849 = vmatprep.subr.mxu0 %v3101_v35  ;;  %v790_v5 = vcombine.high %v745_v41, %v777_v48  ;;  %v965_v7 = vrot.slane %v957_v56, %v3229_v59 }
 0x2e6   :  { %v993_v6 = vcombine.low %v949_v55, %v981_v0  ;;  %v926_v8 = vcombine.high %v869_v46, %v885_v47  ;;  %v958_v9 = vcombine.high %v901_v42, %v917_v43  ;;  %v956_v10 = vrot.slane %v942_v61, %v3229_v59 }
 0x2e7   :  { %2832 = vmatmul.mubr.msk.f32.vlgmr.msra.gmra.mrb[0].mxu1 %vm1065_vm2, %v785_v1  ;;  %2842 = vmatmul.mubr.msk.f32.vlgmr.msra.gmra.mrb[2].mxu0 %vm1065_vm2, %v787_v3  ;;  %v988_v11 = vrot.slane %v974_v54, %v3229_v59  ;;  %v786_v12 = vcombine.high %v729_v60, %v761_v62  ;;  %v989_v13 = vcombine.low %v933_v4, %v965_v7 }
 0x2e8   :  { %2835 = vmatpush3.xpose.msk.msra.mxu1 %vm1065_vm2, %v790_v5  ;;  %2836 = vmatprep.mubr.msk.f32.mxu1 %vm3102_vm1, %v3101_v35  ;;  %v792_v14 = vcombine.high %v752_v45, %v784_v49  ;;  %v940_v15 = vrot.slane %v926_v8, %v3229_v59  ;;  %v972_v16 = vrot.slane %v958_v9, %v3229_v59 }
 0x2e9   :  { %2844 = vmatprep.subr.mxu1 %v3101_v35  ;;  %2850 = vmatpush3.xpose.msk.msra.mxu0 %vm1065_vm2, %v993_v6  ;;  %v995_v17 = vcombine.low %v956_v10, %v988_v11  ;;  %v788_v18 = vcombine.high %v736_v63, %v768_v2  ;;  %v994_v21 = vcombine.high %v949_v55, %v981_v0 }
 0x2ea   :  { %2851 = vmatprep.mubr.msk.f32.mxu0 %vm3102_vm1, %v3101_v35  ;;  %2859 = vmatprep.subr.mxu0 %v3101_v35  ;;  %v990_v19 = vcombine.high %v933_v4, %v965_v7  ;;  %v991_v20 = vcombine.low %v940_v15, %v972_v16  ;;  %v996_v22 = vcombine.high %v956_v10, %v988_v11 }
 0x2eb   :  { %2837 = vmatmul.mubr.msk.f32.vlgmr.msra.gmra.mrb[2].mxu1 %vm1065_vm2, %v786_v12  ;;  %v992_v23 = vcombine.high %v940_v15, %v972_v16 }
 0x2ec   :  { %2845 = vmatpush3.xpose.msk.msra.mxu1 %vm1065_vm2, %v792_v14  ;;  %2846 = vmatprep.mubr.msk.f32.mxu1 %vm3102_vm1, %v3101_v35 }
 0x2ed   :  { %2854 = vmatprep.subr.mxu1 %v3101_v35  ;;  %2852 = vmatmul.mubr.msk.f32.vlgmr.msra.gmra.mrb[4].mxu0 %vm1065_vm2, %v989_v13 }
 0x2ee   :  { %2860 = vmatpush3.xpose.msk.msra.mxu0 %vm1065_vm2, %v995_v17  ;;  %2861 = vmatprep.mubr.msk.f32.mxu0 %vm3102_vm1, %v3101_v35 }
 0x2ef   :  { %2847 = vmatmul.mubr.msk.f32.vlgmr.msra.gmra.mrb[4].mxu1 %vm1065_vm2, %v788_v18  ;;  %2869 = vmatprep.subr.mxu0 %v3101_v35 }
 0x2f0   :  { %2855 = vmatpush3.xpose.msk.msra.mxu1 %vm1065_vm2, %v994_v21  ;;  %2856 = vmatprep.mubr.msk.f32.mxu1 %vm3102_vm1, %v3101_v35 }
 0x2f1   :  { %2864 = vmatprep.subr.mxu1 %v3101_v35  ;;  %2862 = vmatmul.mubr.msk.f32.vlgmr.msra.gmra.mrb[6].mxu0 %vm1065_vm2, %v991_v20 }
 0x2f2   :  { %2871 = vmatprep.mubr.msk.f32.mxu0 %vm3102_vm1, %v3101_v35 }
 0x2f3   :  { %2857 = vmatmul.mubr.msk.f32.vlgmr.msra.gmra.mrb[6].mxu1 %vm1065_vm2, %v990_v19 }
 0x2f4   :  { %2865 = vmatpush3.xpose.msk.msra.mxu1 %vm1065_vm2, %v996_v22  ;;  %2866 = vmatprep.mubr.msk.f32.mxu1 %vm3102_vm1, %v3101_v35 }
 0x2f5   :  { %2874 = vmatprep.subr.mxu1 %v3101_v35 }
 0x2f7   :  { %2867 = vmatmul.mubr.msk.f32.vlgmr.msra.gmra.mrb[8].mxu1 %vm1065_vm2, %v992_v23 }
 0x2f8   :  { %2876 = vmatprep.mubr.msk.f32.mxu1 %vm3102_vm1, %v3101_v35 }
 0x3ba   :  { %v1138_v24 = vpop.f32.mrb[0].mxu1  ;;  %v1290_v25 = vpop.f32.mrb[2].mxu0 }
 0x3bb   :  { %v2833_v26 = vpop.f32.mrb[1].mxu1  ;;  %v2843_v27 = vpop.f32.mrb[3].mxu0  ;;  %v1674_v28 = vsel %vm1065_vm2, %v1138_v24, -inf  ;;  %v1680_v33 = vsel %vm1065_vm2, %v1290_v25, -inf }
 0x3bc   :  { %1675 = vmax.xlane.f32.xlu0 %v1674_v28 }
 0x3be   :  { %v1214_v29 = vpop.f32.mrb[2].mxu1 }
 0x3bf   :  { %v2838_v31 = vpop.f32.mrb[3].mxu1  ;;  %v1677_v37 = vsel %vm1065_vm2, %v1214_v29, -inf }
 0x3c0   :  { %1681 = vmax.xlane.f32.xlu0 %v1680_v33  ;;  %1678 = vmax.xlane.f32.xlu1 %v1677_v37  ;;  %v1442_v38 = vpop.f32.mrb[4].mxu0 }
 0x3c1   :  { %v2853_v39 = vpop.f32.mrb[5].mxu0  ;;  %v1686_v40 = vsel %vm1065_vm2, %v1442_v38, -inf }
 0x3c2   :  { %v1366_v41 = vpop.f32.mrb[4].mxu1 }
 0x3c3   :  { %v2848_v36 = vpop.f32.mrb[5].mxu1  ;;  %v1683_v42 = vsel %vm1065_vm2, %v1366_v41, -inf }
 0x3c4   :  { %1687 = vmax.xlane.f32.xlu0 %v1686_v40  ;;  %v1594_v44 = vpop.f32.mrb[6].mxu0 }
 0x3c5   :  { %v2863_v45 = vpop.f32.mrb[7].mxu0  ;;  %v1692_v49 = vsel %vm1065_vm2, %v1594_v44, -inf }
 0x3c6   :  { %v3377_v46 = vpop.f32.mrb[6].mxu1 }
 0x3c7   :  { %v2858_v47 = vpop.f32.mrb[7].mxu1  ;;  %v1689_v51 = vsel %vm1065_vm2, %v3377_v46, -inf }
 0x3c8   :  { %1684 = vmax.xlane.f32.xlu0 %v1683_v42 }
 0x3ca   :  { %v3380_v43 = vpop.f32.mrb[8].mxu1 }
 0x3cb   :  { %v2868_v48 = vpop.f32.mrb[9].mxu1  ;;  %v1695_v52 = vsel %vm1065_vm2, %v3380_v43, -inf }
 0x3cc   :  { %1693 = vmax.xlane.f32.xlu0 %v1692_v49 }
 0x3d1   :  { %231 = vrot.lane.b32.xlu1 %v3203_v34, %s3105_s8 }
 0x3d5   :  { %237 = vrot.lane.b32.xlu1 %v3203_v34, %s3106_s9 }
 0x3e2   :  { %225 = vrot.lane.b32.xlu0 %v3203_v34, %s3107_s10 }
 0x3f9   :  { %1690 = vmax.xlane.f32.xlu1 %v1689_v51 }
 0x3fd   :  { %1696 = vmax.xlane.f32.xlu1 %v1695_v52 }
 0x40e   :  { %243 = vrot.lane.b32.xlu1 %v3203_v34, %s3108_s11 }
 0x449   :  { %v1676_v53 = vpop.xlane.xlu0 %1675 }
 0x44a   :  { %v1698_v56 = vsub.f32 %v1138_v24, %v1676_v53 }
 0x44c   :  { %v1706_v57 = vmul.f32 1.442695, %v1698_v56 }
 0x44d   :  { %v1679_v58 = vpop.xlane.xlu1 %1678  ;;  %v1682_v60 = vpop.xlane.xlu0 %1681 }
 0x44e   :  { %2963 = vpow2.f32 %v1706_v57  ;;  %v1699_v61 = vsub.f32 %v1214_v29, %v1679_v58  ;;  %v1700_v62 = vsub.f32 %v1290_v25, %v1682_v60 }
 0x450   :  { %v1708_v63 = vmul.f32 1.442695, %v1699_v61  ;;  %v1710_v2 = vmul.f32 1.442695, %v1700_v62 }
 0x451   :  { %v1688_v54 = vpop.xlane.xlu0 %1687  ;;  %v232_v21 = vpop.permute.xlu1 %231 }
 0x452   :  { %2965 = vpow2.f32 %v1708_v63  ;;  %v1702_v55 = vsub.f32 %v1442_v38, %v1688_v54 }
 0x453   :  { %2967 = vpow2.f32 %v1710_v2 }
 0x454   :  { %v1714_v0 = vmul.f32 1.442695, %v1702_v55 }
 0x455   :  { %v1685_v1 = vpop.xlane.xlu0 %1684  ;;  %v238_v19 = vpop.permute.xlu1 %237 }
 0x456   :  { %2969 = vpow2.f32 %v1714_v0  ;;  %v1701_v3 = vsub.f32 %v1366_v41, %v1685_v1 }
 0x458   :  { %v3395_v4 = vpop.eup %2963  ;;  %v1712_v34 = vmul.f32 1.442695, %v1701_v3 }
 0x459   :  { %v1722_v5 = vsel %vm1065_vm2, %v3395_v4, 0.0  ;;  %v1694_v6 = vpop.xlane.xlu0 %1693 }
 0x45a   :  { %2971 = vpow2.f32 %v1712_v34  ;;  %1723 = vadd.xlane.f32.xlu0 %v1722_v5  ;;  %v1704_v7 = vsub.f32 %v1594_v44, %v1694_v6 }
 0x45c   :  { %v3399_v8 = vpop.eup %2965  ;;  %v1718_v9 = vmul.f32 1.442695, %v1704_v7 }
 0x45d   :  { %v3401_v10 = vpop.eup %2967  ;;  %v1725_v11 = vsel %vm1065_vm2, %v3399_v8, 0.0  ;;  %v226_v24 = vpop.permute.xlu0 %225 }
 0x45e   :  { %2973 = vpow2.f32 %v1718_v9  ;;  %1726 = vadd.xlane.f32.xlu1 %v1725_v11  ;;  %v1728_v12 = vsel %vm1065_vm2, %v3401_v10, 0.0  ;;  %v385_v27 = vcombine.low %v226_v24, %v238_v19  ;;  %v386_v28 = vcombine.high %v226_v24, %v238_v19 }
 0x45f   :  { %1729 = vadd.xlane.f32.xlu0 %v1728_v12 }
 0x460   :  { %v3407_v13 = vpop.eup %2969  ;;  %v393_v38 = vrot.slane %v385_v27, %v3227_v50  ;;  %v400_v39 = vrot.slane %v386_v28, %v3227_v50 }
 0x461   :  { %v1734_v14 = vsel %vm1065_vm2, %v3407_v13, 0.0 }
 0x463   :  { %1735 = vadd.xlane.f32.xlu0 %v1734_v14 }
 0x464   :  { %v3411_v15 = vpop.eup %2971 }
 0x465   :  { %v1731_v16 = vsel %vm1065_vm2, %v3411_v15, 0.0 }
 0x466   :  { %1732 = vadd.xlane.f32.xlu1 %v1731_v16 }
 0x468   :  { %v3415_v17 = vpop.eup %2973 }
 0x469   :  { %v1740_v18 = vsel %vm1065_vm2, %v3415_v17, 0.0 }
 0x46a   :  { %1741 = vadd.xlane.f32.xlu0 %v1740_v18 }
 0x486   :  { %v1691_v20 = vpop.xlane.xlu1 %1690 }
 0x487   :  { %v1703_v22 = vsub.f32 %v3377_v46, %v1691_v20 }
 0x489   :  { %v1716_v23 = vmul.f32 1.442695, %v1703_v22 }
 0x48a   :  { %v1697_v25 = vpop.xlane.xlu1 %1696 }
 0x48b   :  { %2975 = vpow2.f32 %v1716_v23  ;;  %v1705_v26 = vsub.f32 %v3380_v43, %v1697_v25 }
 0x48d   :  { %v1720_v29 = vmul.f32 1.442695, %v1705_v26 }
 0x48e   :  { %v244_v31 = vpop.permute.xlu1 %243 }
 0x48f   :  { %2977 = vpow2.f32 %v1720_v29  ;;  %v401_v33 = vcombine.low %v232_v21, %v244_v31  ;;  %v402_v37 = vcombine.high %v232_v21, %v244_v31 }
 0x491   :  { %v409_v40 = vrot.slane %v401_v33, %v3227_v50  ;;  %v416_v41 = vrot.slane %v402_v37, %v3227_v50 }
 0x493   :  { %v417_v36 = vcombine.low %v393_v38, %v409_v40  ;;  %v418_v44 = vcombine.high %v393_v38, %v409_v40  ;;  %v433_v45 = vcombine.low %v400_v39, %v416_v41  ;;  %v434_v46 = vcombine.high %v400_v39, %v416_v41 }
 0x495   :  { %v3425_v47 = vpop.eup %2975  ;;  %v425_v42 = vrot.slane %v417_v36, %v3229_v59  ;;  %v432_v43 = vrot.slane %v418_v44, %v3229_v59  ;;  %v441_v48 = vrot.slane %v433_v45, %v3229_v59  ;;  %v448_v49 = vrot.slane %v434_v46, %v3229_v59 }
 0x496   :  { %v1737_v51 = vsel %vm1065_vm2, %v3425_v47, 0.0 }
 0x497   :  { %v793_v52 = vcombine.low %v425_v42, %v432_v43  ;;  %v2724_v53 = vcombine.high %v425_v42, %v432_v43  ;;  %v809_v56 = vcombine.low %v441_v48, %v448_v49  ;;  %v2725_v57 = vcombine.high %v441_v48, %v448_v49  ;;  %1738 = vadd.xlane.f32.xlu1 %v1737_v51 }
 0x499   :  { %v3433_v58 = vpop.eup %2977  ;;  %v800_v60 = vrot.slane %v793_v52, %v3227_v50  ;;  %v808_v61 = vrot.slane %v2724_v53, %v3227_v50  ;;  %v816_v62 = vrot.slane %v809_v56, %v3227_v50  ;;  %v824_v63 = vrot.slane %v2725_v57, %v3227_v50 }
 0x49a   :  { %v1743_v2 = vsel %vm1065_vm2, %v3433_v58, 0.0 }
 0x49b   :  { %1744 = vadd.xlane.f32.xlu0 %v1743_v2  ;;  %v825_v54 = vcombine.low %v800_v60, %v808_v61  ;;  %v841_v55 = vcombine.low %v816_v62, %v824_v63  ;;  %v826_v0 = vcombine.high %v800_v60, %v808_v61  ;;  %v842_v1 = vcombine.high %v816_v62, %v824_v63 }
 0x49d   :  { %v833_v3 = vrot.slane %v825_v54, %v3229_v59  ;;  %v849_v34 = vrot.slane %v841_v55, %v3229_v59  ;;  %v840_v5 = vrot.slane %v826_v0, %v3229_v59  ;;  %v856_v6 = vrot.slane %v842_v1, %v3229_v59 }
 0x49f   :  { %v857_v7 = vcombine.low %v833_v3, %v849_v34  ;;  %v858_v9 = vcombine.high %v833_v3, %v849_v34  ;;  %v859_v11 = vcombine.low %v840_v5, %v856_v6  ;;  %v860_v12 = vcombine.high %v840_v5, %v856_v6 }
 0x4a1   :  { %2870 = vmatpush3.msra.mxu0 %v857_v7  ;;  %2875 = vmatpush3.msra.mxu1 %v858_v9 }
 0x4a2   :  { %2879 = vmatprep.subr.mxu0 %v3101_v35  ;;  %2884 = vmatprep.subr.mxu1 %v3101_v35 }
 0x4a8   :  { %233 = vrot.lane.b32.xlu1 %v3200_v32, %s3105_s8 }
 0x4ac   :  { %239 = vrot.lane.b32.xlu1 %v3200_v32, %s3106_s9 }
 0x4b0   :  { %245 = vrot.lane.b32.xlu1 %v3200_v32, %s3108_s11 }
 0x4b1   :  { %227 = vrot.lane.b32.xlu0 %v3200_v32, %s3107_s10 }
 0x4b5   :  { %2688 = vrot.lane.b32.xlu0 %v3197_v30, %s3109_s12 }
 0x4e7   :  { %v1724_v14 = vpop.xlane.xlu0 %1723 }
 0x4e8   :  { %2979 = vrcp.f32 %v1724_v14 }
 0x4eb   :  { %v1727_v16 = vpop.xlane.xlu1 %1726 }
 0x4ec   :  { %2981 = vrcp.f32 %v1727_v16  ;;  %v1730_v18 = vpop.xlane.xlu0 %1729 }
 0x4ed   :  { %2983 = vrcp.f32 %v1730_v18 }
 0x4f2   :  { %v2980_v21 = vpop.eup %2979 }
 0x4f3   :  { %v1747_v19 = vmul.f32 %v2980_v21, %v3395_v4  ;;  %v1733_v20 = vpop.xlane.xlu1 %1732 }
 0x4f4   :  { %2985 = vrcp.f32 %v1733_v20 }
 0x4f5   :  { %2872 = vmatmul.mubr.msk.f32.vlgmr.msra.gmra.mrb[8].mxu0 %vm1065_vm2, %v1747_v19 }
 0x4f6   :  { %v2982_v22 = vpop.eup %2981  ;;  %2880 = vmatpush3.msra.mxu0 %v859_v11  ;;  %2881 = vmatprep.mubr.msk.f32.mxu0 %vm3102_vm1, %v3101_v35 }
 0x4f7   :  { %v2984_v23 = vpop.eup %2983  ;;  %v1749_v32 = vmul.f32 %v2982_v22, %v3399_v8  ;;  %2889 = vmatprep.subr.mxu0 %v3101_v35 }
 0x4f8   :  { %v1751_v24 = vmul.f32 %v2984_v23, %v3401_v10  ;;  %v1736_v10 = vpop.xlane.xlu0 %1735 }
 0x4f9   :  { %2877 = vmatmul.mubr.msk.f32.vlgmr.msra.gmra.mrb[10].mxu1 %vm1065_vm2, %v1749_v32  ;;  %2987 = vrcp.f32 %v1736_v10 }
 0x4fa   :  { %2882 = vmatmul.mubr.msk.f32.vlgmr.msra.gmra.mrb[10].mxu0 %vm1065_vm2, %v1751_v24  ;;  %2885 = vmatpush3.msra.mxu1 %v860_v12 }
 0x4fb   :  { %2886 = vmatprep.mubr.msk.f32.mxu1 %vm3102_vm1, %v3101_v35  ;;  %2894 = vmatprep.subr.mxu1 %v3101_v35 }
 0x4fc   :  { %2891 = vmatprep.mubr.msk.f32.mxu0 %vm3102_vm1, %v3101_v35  ;;  %v1742_v25 = vpop.xlane.xlu0 %1741 }
 0x4fe   :  { %v2986_v4 = vpop.eup %2985 }
 0x4ff   :  { %v1753_v8 = vmul.f32 %v2986_v4, %v3411_v15 }
 0x501   :  { %2887 = vmatmul.mubr.msk.f32.vlgmr.msra.gmra.mrb[12].mxu1 %vm1065_vm2, %v1753_v8 }
 0x502   :  { %2896 = vmatprep.mubr.msk.f32.mxu1 %vm3102_vm1, %v3101_v35 }
 0x503   :  { %v2988_v54 = vpop.eup %2987 }
 0x524   :  { %v1739_v26 = vpop.xlane.xlu1 %1738 }
 0x525   :  { %2989 = vrcp.f32 %v1739_v26 }
 0x526   :  { %2991 = vrcp.f32 %v1742_v25 }
 0x528   :  { %v234_v27 = vpop.permute.xlu1 %233  ;;  %v1745_v28 = vpop.xlane.xlu0 %1744 }
 0x529   :  { %2993 = vrcp.f32 %v1745_v28 }
 0x52c   :  { %v240_v29 = vpop.permute.xlu1 %239  ;;  %v228_v31 = vpop.permute.xlu0 %227 }
 0x52d   :  { %v589_v33 = vcombine.low %v228_v31, %v240_v29  ;;  %v590_v37 = vcombine.high %v228_v31, %v240_v29 }
 0x52f   :  { %v597_v15 = vrot.slane %v589_v33, %v3227_v50  ;;  %v604_v41 = vrot.slane %v590_v37, %v3227_v50  ;;  %v2990_v34 = vpop.eup %2989 }
 0x530   :  { %v246_v38 = vpop.permute.xlu1 %245  ;;  %v2992_v7 = vpop.eup %2991  ;;  %v1757_v18 = vmul.f32 %v2990_v34, %v3425_v47  ;;  %v2347_v47 = vld [vmem:[#allocation7 + $0x8] sm:$0xff] }
 0x531   :  { %v605_v39 = vcombine.low %v234_v27, %v246_v38  ;;  %v606_v40 = vcombine.high %v234_v27, %v246_v38 }
 0x533   :  { %v613_v36 = vrot.slane %v605_v39, %v3227_v50  ;;  %v620_v44 = vrot.slane %v606_v40, %v3227_v50  ;;  %v2994_v16 = vpop.eup %2993 }
 0x534   :  { %v1761_v20 = vmul.f32 %v2994_v16, %v3433_v58  ;;  %v2349_v58 = vld [vmem:[#allocation7 + $0x18] sm:$0xff] }
 0x535   :  { %v621_v45 = vcombine.low %v597_v15, %v613_v36  ;;  %v622_v46 = vcombine.high %v597_v15, %v613_v36  ;;  %v637_v42 = vcombine.low %v604_v41, %v620_v44  ;;  %v638_v43 = vcombine.high %v604_v41, %v620_v44 }
 0x537   :  { %v629_v48 = vrot.slane %v621_v45, %v3229_v59  ;;  %v636_v49 = vrot.slane %v622_v46, %v3229_v59  ;;  %v645_v51 = vrot.slane %v637_v42, %v3229_v59  ;;  %v652_v52 = vrot.slane %v638_v43, %v3229_v59 }
 0x539   :  { %v997_v53 = vcombine.low %v629_v48, %v636_v49  ;;  %v2734_v56 = vcombine.high %v629_v48, %v636_v49  ;;  %v1013_v57 = vcombine.low %v645_v51, %v652_v52  ;;  %v2735_v60 = vcombine.high %v645_v51, %v652_v52 }
 0x53b   :  { %v1004_v61 = vrot.slane %v997_v53, %v3227_v50  ;;  %v1012_v62 = vrot.slane %v2734_v56, %v3227_v50  ;;  %v1020_v63 = vrot.slane %v1013_v57, %v3227_v50  ;;  %v1028_v2 = vrot.slane %v2735_v60, %v3227_v50  ;;  %v2689_v60 = vpop.permute.xlu0 %2688 }
 0x53c   :  { %v1755_v50 = vmul.f32 %v2988_v54, %v3407_v13  ;;  %v2346_v13 = vld [vmem:[#allocation7] sm:$0xff] }
 0x53d   :  { %v1029_v55 = vcombine.low %v1004_v61, %v1012_v62  ;;  %v1045_v0 = vcombine.low %v1020_v63, %v1028_v2  ;;  %v1030_v1 = vcombine.high %v1004_v61, %v1012_v62  ;;  %v1046_v3 = vcombine.high %v1020_v63, %v1028_v2 }
 0x53f   :  { %v1037_v5 = vrot.slane %v1029_v55, %v3229_v59  ;;  %v1053_v6 = vrot.slane %v1045_v0, %v3229_v59  ;;  %v1044_v9 = vrot.slane %v1030_v1, %v3229_v59  ;;  %v1060_v11 = vrot.slane %v1046_v3, %v3229_v59 }
 0x540   :  { %v1759_v59 = vmul.f32 %v2992_v7, %v3415_v17  ;;  %v2348_v17 = vld [vmem:[#allocation7 + $0x10] sm:$0xff] }
 0x541   :  { %v1061_v12 = vcombine.low %v1037_v5, %v1053_v6  ;;  %v1062_v14 = vcombine.high %v1037_v5, %v1053_v6  ;;  %v1063_v21 = vcombine.low %v1044_v9, %v1060_v11  ;;  %v1064_v19 = vcombine.high %v1044_v9, %v1060_v11 }
 0x543   :  { %2890 = vmatpush3.msra.mxu0 %v1061_v12  ;;  %2895 = vmatpush3.msra.mxu1 %v1062_v14 }
 0x544   :  { %2892 = vmatmul.mubr.msk.f32.vlgmr.msra.gmra.mrb[12].mxu0 %vm1065_vm2, %v1755_v50  ;;  %2897 = vmatmul.mubr.msk.f32.vlgmr.msra.gmra.mrb[14].mxu1 %vm1065_vm2, %v1757_v18 }
 0x545   :  { %2899 = vmatprep.subr.mxu0 %v3101_v35  ;;  %2904 = vmatprep.subr.mxu1 %v3101_v35 }
 0x546   :  { %2900 = vmatpush3.msra.mxu0 %v1063_v21  ;;  %2905 = vmatpush3.msra.mxu1 %v1064_v19 }
 0x547   :  { %2901 = vmatprep.mubr.msk.f32.mxu0 %vm3102_vm1, %v3101_v35  ;;  %2906 = vmatprep.mubr.msk.f32.mxu1 %vm3102_vm1, %v3101_v35 }
 0x548   :  { %2902 = vmatmul.mubr.msk.f32.vlgmr.msra.gmra.mrb[14].mxu0 %vm1065_vm2, %v1759_v59  ;;  %2907 = vmatmul.mubr.msk.f32.vlgmr.msra.gmra.mrb[16].mxu1 %vm1065_vm2, %v1761_v20 }
 0x549   :  { %2909 = vmatprep.subr.mxu0 %v2346_v13  ;;  %2914 = vmatprep.subr.mxu1 %v2347_v47 }
 0x54a   :  { %2910 = vmatpush3.msra.mxu0 %v2346_v13  ;;  %2915 = vmatpush3.msra.mxu1 %v2347_v47 }
 0x54b   :  { %2919 = vmatprep.subr.mxu0 %v2348_v17  ;;  %2924 = vmatprep.subr.mxu1 %v2349_v58 }
 0x5c8   :  { %v1831_v22 = vpop.f32.mrb[8].mxu0 }
 0x5c9   :  { %v2873_v23 = vpop.f32.mrb[9].mxu0  ;;  %2911 = vmatprep.mubr.msk.f32.mxu0 %vm1065_vm2, %v1831_v22 }
 0x5cc   :  { %v1904_v35 = vpop.f32.mrb[10].mxu1 }
 0x5cd   :  { %v1977_v32 = vpop.f32.mrb[10].mxu0  ;;  %v2878_v24 = vpop.f32.mrb[11].mxu1  ;;  %2916 = vmatprep.mubr.msk.f32.mxu1 %vm1065_vm2, %v1904_v35 }
 0x5ce   :  { %v2883_v4 = vpop.f32.mrb[11].mxu0 }
 0x5d4   :  { %v2050_v8 = vpop.f32.mrb[12].mxu1 }
 0x5d5   :  { %v2888_v10 = vpop.f32.mrb[13].mxu1 }
 0x617   :  { %v2123_v25 = vpop.f32.mrb[12].mxu0  ;;  %v2196_v26 = vpop.f32.mrb[14].mxu1 }
 0x618   :  { %v2893_v27 = vpop.f32.mrb[13].mxu0  ;;  %v2898_v28 = vpop.f32.mrb[15].mxu1  ;;  %2912 = vmatmul.mubr.msk.f32.vlgmr.msra.gmra.mrb[16].mxu0 %vm1065_vm2, %v2123_v25  ;;  %2917 = vmatmul.mubr.msk.f32.vlgmr.msra.gmra.mrb[18].mxu1 %vm1065_vm2, %v2196_v26 }
 0x619   :  { %2921 = vmatprep.mubr.msk.f32.mxu0 %vm1065_vm2, %v1977_v32  ;;  %2926 = vmatprep.mubr.msk.f32.mxu1 %vm1065_vm2, %v2050_v8 }
 0x61a   :  { %2920 = vmatpush3.msra.mxu0 %v2348_v17  ;;  %2925 = vmatpush3.msra.mxu1 %v2349_v58 }
 0x61b   :  { %v2269_v30 = vpop.f32.mrb[14].mxu0  ;;  %v2342_v29 = vpop.f32.mrb[16].mxu1 }
 0x61c   :  { %v2903_v31 = vpop.f32.mrb[15].mxu0  ;;  %v2908_v33 = vpop.f32.mrb[17].mxu1  ;;  %2922 = vmatmul.mubr.msk.f32.vlgmr.msra.gmra.mrb[18].mxu0 %vm1065_vm2, %v2269_v30  ;;  %2927 = vmatmul.mubr.msk.f32.vlgmr.msra.gmra.mrb[20].mxu1 %vm1065_vm2, %v2342_v29 }
 0x6eb   :  { %v2913_v37 = vpop.f32.mrb[16].mxu0  ;;  %v2918_v38 = vpop.f32.mrb[18].mxu1 }
 0x6ec   :  { %v2681_v39 = vsel %vm61_vm0, %v2913_v37, 0.0  ;;  %v2682_v40 = vsel %vm61_vm0, %v2918_v38, 0.0  ;;  %v2422_v15 = vpop.f32.mrb[17].mxu0  ;;  %v2503_v41 = vpop.f32.mrb[19].mxu1 }
 0x6ed   :  { %v2683_v36 = vadd.f32 %v2682_v40, %v2681_v39  ;;  %v2674_v44 = vsel %vm61_vm0, %v2422_v15, 0.0  ;;  %v2675_v45 = vsel %vm61_vm0, %v2503_v41, 0.0 }
 0x6ee   :  { %v2676_v46 = vadd.f32 %v2675_v45, %v2674_v44 }
 0x6ef   :  { %v2923_v42 = vpop.f32.mrb[18].mxu0  ;;  %v2928_v43 = vpop.f32.mrb[20].mxu1 }
 0x6f0   :  { %v2684_v48 = vsel %vm61_vm0, %v2923_v42, 0.0  ;;  %v2584_v49 = vpop.f32.mrb[19].mxu0  ;;  %v2665_v51 = vpop.f32.mrb[21].mxu1  ;;  %v2686_v56 = vsel %vm61_vm0, %v2928_v43, 0.0 }
 0x6f1   :  { %v2685_v52 = vadd.f32 %v2684_v48, %v2683_v36  ;;  %v2677_v53 = vsel %vm61_vm0, %v2584_v49, 0.0  ;;  %v2679_v62 = vsel %vm61_vm0, %v2665_v51, 0.0 }
 0x6f2   :  { %v2678_v57 = vadd.f32 %v2677_v53, %v2676_v46 }
 0x6f3   :  { %v2687_v61 = vadd.f32 %v2686_v56, %v2685_v52 }
 0x6f4   :  { %v2680_v63 = vadd.f32 %v2679_v62, %v2678_v57 }
 0x6f5   :  { %v2692_v2 = vadd.f32 %v2689_v60, %v2687_v61 }
 0x6f6   :  { %v2691_v54 = vadd.f32 %v2689_v60, %v2680_v63 }
 0x6f7   :  { %2694 = vst.msk [vmem:[#allocation8 + $0x8] sm:$0xff] %vm61_vm0, %v2692_v2 }
 0x6f8   :  { %2693 = vst.msk [vmem:[#allocation8] sm:$0xff] %vm61_vm0, %v2691_v54 }
 0x6f9   :  { %3072 = shalt.err (!%p3069_p0)
}
 0x6fa   :  { %s3073_s17 = scalar_lea.hbm %s3541_s4, 256 }
 0x6fb   :  { %p3074_p1 = scmp.ne.s32.totalorder %s3541_s4, %s3073_s17  ;;  %p3077_p2 = scmp.lt.u32.totalorder %s3073_s17, %s3541_s4 }
 0x6fd   :  { %p3079_p3 = pnand %p3077_p2, %p3074_p1 }
 0x6ff   :  { %3082 = shalt.err (!%p3079_p3)
}
 0x700   :  { %2706 = dma.vmem_to_hbm [thread:$0]  %s2701_s13, 256, %s3541_s4, [#allocation4], %s3091_s27, %s3091_s27, %s3092_s28  }
 0x701   :  { %3087 = dma.done.wait [#allocation4], 256  }
 0x702   :  { %3088 = vsyncadd [#allocation4], 4294967040 }
 0x703   :  { %2710 = vsyncpa [#allocation3], 1 }
 0x704   :  { %2711 = vsyncpa [#allocation6], 1 }
 0x705   :  { %2712 = vsyncpa [#allocation4], 1 }

</bundles_post_ra>
